<compile_context>
chip_gen: v7x
topology: tpu7x:2x2x1
jax: 0.10.0
libtpu: 0.0.40
codegen_flags: <defaults>
</compile_context>

<pallas_src>
import functools

import jax
import jax.numpy as jnp
import numpy as np
from jax import lax
from jax.experimental import pallas as pl
from jax.experimental.pallas import tpu as pltpu

_BN_EPS = 1e-5


def _residual_block_kernel(*refs, H, W, Cout, has_downsample):
    if has_downsample:
        (x_ref, mask_ref, w1_ref, b1_ref, w2_ref, b2_ref,
         wd_ref, bd_ref, o_ref) = refs
    else:
        x_ref, mask_ref, w1_ref, b1_ref, w2_ref, b2_ref, o_ref = refs

    HW = H * W
    x = x_ref[0]                                   # (Cin_p, HW) f32, lane-dense
    masks = [mask_ref[k] for k in range(9)]        # 9 x (1, HW) f32 boundary masks

    def im2col(act):
        # act: (C, HW) f32 in row-major (h*W + w) spatial layout.
        # Returns the (9*C, HW) bf16 patch matrix for a 3x3 / stride-1 / pad-1
        # conv: tap k = kh*3 + kw holds act shifted by (kh-1, kw-1); out-of-image
        # taps are zeroed by the precomputed masks, so the zero "padding" is
        # never materialized or re-loaded.
        taps = []
        for kh in range(3):
            for kw in range(3):
                dh, dw = kh - 1, kw - 1
                d = dh * W + dw
                if d == 0:
                    taps.append(act)
                else:
                    # shifted[:, p] = act[:, p + d] (wrapped entries are masked)
                    shifted = pltpu.roll(act, (-d) % HW, axis=1)
                    taps.append(shifted * masks[kh * 3 + kw])
        return jnp.concatenate(taps, axis=0).astype(jnp.bfloat16)

    # conv1 (BN1 scale folded into w1) + bias + ReLU -- single MXU matmul.
    acc1 = jnp.dot(w1_ref[...], im2col(x), preferred_element_type=jnp.float32)
    out1 = jnp.maximum(acc1 + b1_ref[...], 0.0)     # (Cmid_p, HW) f32

    # conv2 (BN2 scale folded into w2) + bias.
    acc2 = jnp.dot(w2_ref[...], im2col(out1), preferred_element_type=jnp.float32)
    out2 = acc2 + b2_ref[...]                       # (Cout, HW) f32

    # shortcut: 1x1 conv + BN, or exact identity (specialized at trace time).
    if has_downsample:
        res = jnp.dot(wd_ref[...], x.astype(jnp.bfloat16),
                      preferred_element_type=jnp.float32) + bd_ref[...]
    else:
        res = x[:Cout, :]                           # identity shortcut, f32

    o_ref[0] = jnp.maximum(out2 + res, 0.0)


def _fold_bn(gamma, beta, mean, var, eps=_BN_EPS):
    scale = gamma / jnp.sqrt(var + eps)
    bias = beta - mean * scale
    return scale, bias


def _round_up(v, m):
    return (v + m - 1) // m * m


def make_params(key, inchannel, outchannel, stride=1):
    """Deterministic synthetic parameters with the same shapes as the nn.Module."""
    ks = jax.random.split(key, 6)

    def bn_params(k):
        k1, k2, k3, k4 = jax.random.split(k, 4)
        gamma = 1.0 + 0.1 * jax.random.normal(k1, (outchannel,), jnp.float32)
        beta = 0.1 * jax.random.normal(k2, (outchannel,), jnp.float32)
        mean = 0.1 * jax.random.normal(k3, (outchannel,), jnp.float32)
        var = 0.5 + jnp.abs(jax.random.normal(k4, (outchannel,), jnp.float32))
        return gamma, beta, mean, var

    p = {}
    p["w1"] = 0.2 * jax.random.normal(ks[0], (outchannel, inchannel, 3, 3), jnp.float32)
    p["bn1_gamma"], p["bn1_beta"], p["bn1_mean"], p["bn1_var"] = bn_params(ks[1])
    p["w2"] = 0.2 * jax.random.normal(ks[2], (outchannel, outchannel, 3, 3), jnp.float32)
    p["bn2_gamma"], p["bn2_beta"], p["bn2_mean"], p["bn2_var"] = bn_params(ks[3])
    if stride != 1 or inchannel != outchannel:
        p["wd"] = 0.2 * jax.random.normal(ks[4], (outchannel, inchannel, 1, 1), jnp.float32)
        p["bnd_gamma"], p["bnd_beta"], p["bnd_mean"], p["bnd_var"] = bn_params(ks[5])
    return p


def residual_block_forward(x_nchw, params, stride=1):
    if stride != 1:
        # TODO(synk): strided (stride>1) conv path not implemented in this kernel.
        raise NotImplementedError("only stride=1 supported in the Pallas kernel")

    N, Cin, H, W = x_nchw.shape
    Cout = params["w1"].shape[0]
    Cmid = Cout
    HW = H * W
    has_downsample = "wd" in params
    if not has_downsample and Cin != Cout:
        raise ValueError("identity shortcut requires inchannel == outchannel")

    # Pad channel counts to sublane multiples (8) so in-kernel tap concatenation
    # and weight blocks stay tile-aligned.  Spatial padding is never materialized.
    Cin_p = _round_up(Cin, 8)
    Cmid_p = _round_up(Cmid, 8)

    x = x_nchw.astype(jnp.float32).reshape(N, Cin, HW)   # NCHW kept; free reshape
    if Cin_p != Cin:
        x = jnp.pad(x, ((0, 0), (0, Cin_p - Cin), (0, 0)))

    s1, b1 = _fold_bn(params["bn1_gamma"], params["bn1_beta"],
                      params["bn1_mean"], params["bn1_var"])
    s2, b2 = _fold_bn(params["bn2_gamma"], params["bn2_beta"],
                      params["bn2_mean"], params["bn2_var"])

    def conv3x3_weight(w_oihw, scale, cin, cin_p, rows_p):
        # torch (O, I, 3, 3) -> bf16 (rows_p, 9*cin_p) with BN scale folded in;
        # column order (kh*3 + kw)*cin_p + ci matches the kernel tap order.
        o = w_oihw.shape[0]
        w = w_oihw * scale[:, None, None, None]
        w = jnp.transpose(w, (0, 2, 3, 1))                      # (O, 3, 3, I)
        w = jnp.pad(w, ((0, rows_p - o), (0, 0), (0, 0), (0, cin_p - cin)))
        return w.reshape(rows_p, 9 * cin_p).astype(jnp.bfloat16)

    w1b = conv3x3_weight(params["w1"], s1, Cin, Cin_p, Cmid_p)
    w2b = conv3x3_weight(params["w2"], s2, Cmid, Cmid_p, Cout)
    b1c = jnp.pad(b1, (0, Cmid_p - Cmid)).reshape(Cmid_p, 1).astype(jnp.float32)
    b2c = b2.reshape(Cout, 1).astype(jnp.float32)

    # Per-tap boundary-validity masks (replace explicit zero padding).
    row = np.repeat(np.arange(H), W)
    col = np.tile(np.arange(W), H)
    masks_np = np.ones((9, 1, HW), np.float32)
    for kh in range(3):
        for kw in range(3):
            dh, dw = kh - 1, kw - 1
            valid = ((row + dh >= 0) & (row + dh < H)
                     & (col + dw >= 0) & (col + dw < W))
            masks_np[kh * 3 + kw, 0, :] = valid
    masks = jnp.asarray(masks_np)

    inputs = [x, masks, w1b, b1c, w2b, b2c]
    in_specs = [
        pl.BlockSpec((1, Cin_p, HW), lambda n: (n, 0, 0)),
        pl.BlockSpec((9, 1, HW), lambda n: (0, 0, 0)),
        pl.BlockSpec((Cmid_p, 9 * Cin_p), lambda n: (0, 0)),
        pl.BlockSpec((Cmid_p, 1), lambda n: (0, 0)),
        pl.BlockSpec((Cout, 9 * Cmid_p), lambda n: (0, 0)),
        pl.BlockSpec((Cout, 1), lambda n: (0, 0)),
    ]
    flops = 2 * HW * (9 * Cin_p * Cmid_p + 9 * Cmid_p * Cout)

    if has_downsample:
        sd, bd = _fold_bn(params["bnd_gamma"], params["bnd_beta"],
                          params["bnd_mean"], params["bnd_var"])
        wd = params["wd"][:, :, 0, 0] * sd[:, None]             # (Cout, Cin)
        wd = jnp.pad(wd, ((0, 0), (0, Cin_p - Cin))).astype(jnp.bfloat16)
        bdc = bd.reshape(Cout, 1).astype(jnp.float32)
        inputs += [wd, bdc]
        in_specs += [pl.BlockSpec((Cout, Cin_p), lambda n: (0, 0)),
                     pl.BlockSpec((Cout, 1), lambda n: (0, 0))]
        flops += 2 * HW * Cin_p * Cout
    flops *= N

    bytes_accessed = sum(int(np.prod(a.shape)) * a.dtype.itemsize for a in inputs)
    bytes_accessed += N * Cout * HW * 4                         # output

    kernel = functools.partial(
        _residual_block_kernel, H=H, W=W, Cout=Cout,
        has_downsample=has_downsample)

    out = pl.pallas_call(
        kernel,
        out_shape=jax.ShapeDtypeStruct((N, Cout, HW), jnp.float32),
        grid=(N,),
        in_specs=in_specs,
        out_specs=pl.BlockSpec((1, Cout, HW), lambda n: (n, 0, 0)),
        compiler_params=pltpu.CompilerParams(
            dimension_semantics=("parallel",)),
        cost_estimate=pl.CostEstimate(
            flops=int(flops), transcendentals=0,
            bytes_accessed=int(bytes_accessed)),
    )(*inputs)

    return out.reshape(N, Cout, H, W)    # already NCHW; free reshape


def ref_forward(x_nchw, params, stride=1, eps=_BN_EPS):
    """Pure-JAX f32 reference (NCHW, like the PyTorch module, BN in eval mode)."""
    def conv(x, w, s):
        pad_h, pad_w = w.shape[2] // 2, w.shape[3] // 2
        return lax.conv_general_dilated(
            x, w, window_strides=(s, s),
            padding=((pad_h, pad_h), (pad_w, pad_w)),
            dimension_numbers=("NCHW", "OIHW", "NCHW"))

    def bn(x, g, b, m, v):
        sh = (1, -1, 1, 1)
        return (x - m.reshape(sh)) / jnp.sqrt(v.reshape(sh) + eps) * g.reshape(sh) + b.reshape(sh)

    out = conv(x_nchw, params["w1"], stride)
    out = jax.nn.relu(bn(out, params["bn1_gamma"], params["bn1_beta"],
                         params["bn1_mean"], params["bn1_var"]))
    out = conv(out, params["w2"], 1)
    out = bn(out, params["bn2_gamma"], params["bn2_beta"],
             params["bn2_mean"], params["bn2_var"])
    if "wd" in params:
        res = conv(x_nchw, params["wd"], stride)
        res = bn(res, params["bnd_gamma"], params["bnd_beta"],
                 params["bnd_mean"], params["bnd_var"])
    else:
        res = x_nchw
    return jax.nn.relu(out + res)


if __name__ == "__main__":
    key = jax.random.PRNGKey(0)
    k_x, k_p, k_p2 = jax.random.split(key, 3)

    # Tolerance loosened from 2e-3: matmul operands are bf16 (f32 accumulation),
    # while the reference runs entirely in f32 (as flagged in the perf review).
    RTOL = ATOL = 3e-2

    # Case 1: Cin != Cout -> exercises the 1x1-conv downsample branch.
    N, Cin, H, W = 2, 4, 16, 16
    Cout = 8
    x = jax.random.normal(k_x, (N, Cin, H, W), jnp.float32)
    params = make_params(k_p, Cin, Cout, stride=1)
    out = jax.block_until_ready(residual_block_forward(x, params, stride=1))
    ref = ref_forward(x, params, stride=1)
    np.testing.assert_allclose(np.asarray(out), np.asarray(ref), rtol=RTOL, atol=ATOL)

    # Case 2: Cin == Cout -> identity shortcut specialized at trace time
    # (no 1x1 matmul / eye-matrix DMA inside the kernel).
    x2 = jax.random.normal(jax.random.fold_in(k_x, 1), (N, Cout, H, W), jnp.float32)
    params2 = make_params(k_p2, Cout, Cout, stride=1)
    out2 = jax.block_until_ready(residual_block_forward(x2, params2, stride=1))
    ref2 = ref_forward(x2, params2, stride=1)
    np.testing.assert_allclose(np.asarray(out2), np.asarray(ref2), rtol=RTOL, atol=ATOL)

    print("KERNEL_OK")
</pallas_src>

<mosaic_0001>
module attributes {stable_mosaic.version = 11 : i64} {
  func.func @_residual_block_kernel(%arg0: i32, %arg1: memref<1x8x256xf32, #tpu.memory_space<vmem>>, %arg2: memref<9x1x256xf32, #tpu.memory_space<vmem>>, %arg3: memref<8x72xbf16, #tpu.memory_space<vmem>>, %arg4: memref<8x1xf32, #tpu.memory_space<vmem>>, %arg5: memref<8x72xbf16, #tpu.memory_space<vmem>>, %arg6: memref<8x1xf32, #tpu.memory_space<vmem>>, %arg7: memref<8x8xbf16, #tpu.memory_space<vmem>>, %arg8: memref<8x1xf32, #tpu.memory_space<vmem>>, %arg9: memref<1x8x256xf32, #tpu.memory_space<vmem>>) attributes {dimension_semantics = [#tpu.dimension_semantics<parallel>], iteration_bounds = array<i64: 2>, scalar_prefetch = 0 : i64, scratch_operands = 0 : i64, tpu.core_type = #tpu.core_type<tc>, window_params = [{transform_indices = @transform_0, window_bounds = array<i64: 1, 8, 256>}, {pipeline_mode = #tpu.pipeline_mode<synchronous>, transform_indices = @transform_1, window_bounds = array<i64: 9, 1, 256>}, {pipeline_mode = #tpu.pipeline_mode<synchronous>, transform_indices = @transform_2, window_bounds = array<i64: 8, 72>}, {pipeline_mode = #tpu.pipeline_mode<synchronous>, transform_indices = @transform_3, window_bounds = array<i64: 8, 1>}, {pipeline_mode = #tpu.pipeline_mode<synchronous>, transform_indices = @transform_4, window_bounds = array<i64: 8, 72>}, {pipeline_mode = #tpu.pipeline_mode<synchronous>, transform_indices = @transform_5, window_bounds = array<i64: 8, 1>}, {pipeline_mode = #tpu.pipeline_mode<synchronous>, transform_indices = @transform_6, window_bounds = array<i64: 8, 8>}, {pipeline_mode = #tpu.pipeline_mode<synchronous>, transform_indices = @transform_7, window_bounds = array<i64: 8, 1>}, {transform_indices = @transform_8, window_bounds = array<i64: 1, 8, 256>}]} {
    %c0 = arith.constant 0 : index
    %c0_0 = arith.constant 0 : index
    %c0_1 = arith.constant 0 : index
    %0 = vector.load %arg1[%c0, %c0_0, %c0_1] : memref<1x8x256xf32, #tpu.memory_space<vmem>>, vector<1x8x256xf32>
    %1 = vector.shape_cast %0 : vector<1x8x256xf32> to vector<8x256xf32>
    %c0_2 = arith.constant 0 : index
    %c0_3 = arith.constant 0 : index
    %c0_4 = arith.constant 0 : index
    %2 = vector.load %arg2[%c0_2, %c0_3, %c0_4] : memref<9x1x256xf32, #tpu.memory_space<vmem>>, vector<1x1x256xf32>
    %3 = vector.shape_cast %2 : vector<1x1x256xf32> to vector<1x256xf32>
    %c1 = arith.constant 1 : index
    %c0_5 = arith.constant 0 : index
    %c0_6 = arith.constant 0 : index
    %4 = vector.load %arg2[%c1, %c0_5, %c0_6] : memref<9x1x256xf32, #tpu.memory_space<vmem>>, vector<1x1x256xf32>
    %5 = vector.shape_cast %4 : vector<1x1x256xf32> to vector<1x256xf32>
    %c2 = arith.constant 2 : index
    %c0_7 = arith.constant 0 : index
    %c0_8 = arith.constant 0 : index
    %6 = vector.load %arg2[%c2, %c0_7, %c0_8] : memref<9x1x256xf32, #tpu.memory_space<vmem>>, vector<1x1x256xf32>
    %7 = vector.shape_cast %6 : vector<1x1x256xf32> to vector<1x256xf32>
    %c3 = arith.constant 3 : index
    %c0_9 = arith.constant 0 : index
    %c0_10 = arith.constant 0 : index
    %8 = vector.load %arg2[%c3, %c0_9, %c0_10] : memref<9x1x256xf32, #tpu.memory_space<vmem>>, vector<1x1x256xf32>
    %9 = vector.shape_cast %8 : vector<1x1x256xf32> to vector<1x256xf32>
    %c5 = arith.constant 5 : index
    %c0_11 = arith.constant 0 : index
    %c0_12 = arith.constant 0 : index
    %10 = vector.load %arg2[%c5, %c0_11, %c0_12] : memref<9x1x256xf32, #tpu.memory_space<vmem>>, vector<1x1x256xf32>
    %11 = vector.shape_cast %10 : vector<1x1x256xf32> to vector<1x256xf32>
    %c6 = arith.constant 6 : index
    %c0_13 = arith.constant 0 : index
    %c0_14 = arith.constant 0 : index
    %12 = vector.load %arg2[%c6, %c0_13, %c0_14] : memref<9x1x256xf32, #tpu.memory_space<vmem>>, vector<1x1x256xf32>
    %13 = vector.shape_cast %12 : vector<1x1x256xf32> to vector<1x256xf32>
    %c7 = arith.constant 7 : index
    %c0_15 = arith.constant 0 : index
    %c0_16 = arith.constant 0 : index
    %14 = vector.load %arg2[%c7, %c0_15, %c0_16] : memref<9x1x256xf32, #tpu.memory_space<vmem>>, vector<1x1x256xf32>
    %15 = vector.shape_cast %14 : vector<1x1x256xf32> to vector<1x256xf32>
    %c8 = arith.constant 8 : index
    %c0_17 = arith.constant 0 : index
    %c0_18 = arith.constant 0 : index
    %16 = vector.load %arg2[%c8, %c0_17, %c0_18] : memref<9x1x256xf32, #tpu.memory_space<vmem>>, vector<1x1x256xf32>
    %17 = vector.shape_cast %16 : vector<1x1x256xf32> to vector<1x256xf32>
    %c0_19 = arith.constant 0 : index
    %c0_20 = arith.constant 0 : index
    %18 = vector.load %arg3[%c0_19, %c0_20] : memref<8x72xbf16, #tpu.memory_space<vmem>>, vector<8x72xbf16>
    %c17_i32 = arith.constant 17 : i32
    %19 = tpu.dynamic_rotate %1 by %c17_i32 dim 1 : vector<8x256xf32>, i32 -> vector<8x256xf32>
    %20 = vector.broadcast %3 : vector<1x256xf32> to vector<8x256xf32>
    %21 = arith.mulf %19, %20 : vector<8x256xf32>
    %c16_i32 = arith.constant 16 : i32
    %22 = tpu.dynamic_rotate %1 by %c16_i32 dim 1 : vector<8x256xf32>, i32 -> vector<8x256xf32>
    %23 = vector.broadcast %5 : vector<1x256xf32> to vector<8x256xf32>
    %24 = arith.mulf %22, %23 : vector<8x256xf32>
    %c15_i32 = arith.constant 15 : i32
    %25 = tpu.dynamic_rotate %1 by %c15_i32 dim 1 : vector<8x256xf32>, i32 -> vector<8x256xf32>
    %26 = vector.broadcast %7 : vector<1x256xf32> to vector<8x256xf32>
    %27 = arith.mulf %25, %26 : vector<8x256xf32>
    %c1_i32 = arith.constant 1 : i32
    %28 = tpu.dynamic_rotate %1 by %c1_i32 dim 1 : vector<8x256xf32>, i32 -> vector<8x256xf32>
    %29 = vector.broadcast %9 : vector<1x256xf32> to vector<8x256xf32>
    %30 = arith.mulf %28, %29 : vector<8x256xf32>
    %c255_i32 = arith.constant 255 : i32
    %31 = tpu.dynamic_rotate %1 by %c255_i32 dim 1 : vector<8x256xf32>, i32 -> vector<8x256xf32>
    %32 = vector.broadcast %11 : vector<1x256xf32> to vector<8x256xf32>
    %33 = arith.mulf %31, %32 : vector<8x256xf32>
    %c241_i32 = arith.constant 241 : i32
    %34 = tpu.dynamic_rotate %1 by %c241_i32 dim 1 : vector<8x256xf32>, i32 -> vector<8x256xf32>
    %35 = vector.broadcast %13 : vector<1x256xf32> to vector<8x256xf32>
    %36 = arith.mulf %34, %35 : vector<8x256xf32>
    %c240_i32 = arith.constant 240 : i32
    %37 = tpu.dynamic_rotate %1 by %c240_i32 dim 1 : vector<8x256xf32>, i32 -> vector<8x256xf32>
    %38 = vector.broadcast %15 : vector<1x256xf32> to vector<8x256xf32>
    %39 = arith.mulf %37, %38 : vector<8x256xf32>
    %c239_i32 = arith.constant 239 : i32
    %40 = tpu.dynamic_rotate %1 by %c239_i32 dim 1 : vector<8x256xf32>, i32 -> vector<8x256xf32>
    %41 = vector.broadcast %17 : vector<1x256xf32> to vector<8x256xf32>
    %42 = arith.mulf %40, %41 : vector<8x256xf32>
    %43 = tpu.concatenate %21, %24, %27, %30, %1, %33, %36, %39, %42 in 0 : vector<8x256xf32>, vector<8x256xf32>, vector<8x256xf32>, vector<8x256xf32>, vector<8x256xf32>, vector<8x256xf32>, vector<8x256xf32>, vector<8x256xf32>, vector<8x256xf32> -> vector<72x256xf32>
    %44 = arith.truncf %43 : vector<72x256xf32> to vector<72x256xbf16>
    %cst = arith.constant dense<0.000000e+00> : vector<8x256xf32>
    %45 = tpu.matmul %18, %44, %cst {dimension_numbers = #tpu.dot_dimension_numbers<[1], [0], [0], [1], [0, 0, 1, 1], [], []>} : vector<8x72xbf16>, vector<72x256xbf16>, vector<8x256xf32> -> vector<8x256xf32>
    %c0_21 = arith.constant 0 : index
    %c0_22 = arith.constant 0 : index
    %46 = vector.load %arg4[%c0_21, %c0_22] : memref<8x1xf32, #tpu.memory_space<vmem>>, vector<8x1xf32>
    %47 = vector.broadcast %46 : vector<8x1xf32> to vector<8x256xf32>
    %48 = arith.addf %45, %47 : vector<8x256xf32>
    %cst_23 = arith.constant 0.000000e+00 : f32
    %49 = vector.broadcast %cst_23 : f32 to vector<8x256xf32>
    %50 = arith.maximumf %48, %49 : vector<8x256xf32>
    %c0_24 = arith.constant 0 : index
    %c0_25 = arith.constant 0 : index
    %51 = vector.load %arg5[%c0_24, %c0_25] : memref<8x72xbf16, #tpu.memory_space<vmem>>, vector<8x72xbf16>
    %c17_i32_26 = arith.constant 17 : i32
    %52 = tpu.dynamic_rotate %50 by %c17_i32_26 dim 1 : vector<8x256xf32>, i32 -> vector<8x256xf32>
    %53 = vector.broadcast %3 : vector<1x256xf32> to vector<8x256xf32>
    %54 = arith.mulf %52, %53 : vector<8x256xf32>
    %c16_i32_27 = arith.constant 16 : i32
    %55 = tpu.dynamic_rotate %50 by %c16_i32_27 dim 1 : vector<8x256xf32>, i32 -> vector<8x256xf32>
    %56 = vector.broadcast %5 : vector<1x256xf32> to vector<8x256xf32>
    %57 = arith.mulf %55, %56 : vector<8x256xf32>
    %c15_i32_28 = arith.constant 15 : i32
    %58 = tpu.dynamic_rotate %50 by %c15_i32_28 dim 1 : vector<8x256xf32>, i32 -> vector<8x256xf32>
    %59 = vector.broadcast %7 : vector<1x256xf32> to vector<8x256xf32>
    %60 = arith.mulf %58, %59 : vector<8x256xf32>
    %c1_i32_29 = arith.constant 1 : i32
    %61 = tpu.dynamic_rotate %50 by %c1_i32_29 dim 1 : vector<8x256xf32>, i32 -> vector<8x256xf32>
    %62 = vector.broadcast %9 : vector<1x256xf32> to vector<8x256xf32>
    %63 = arith.mulf %61, %62 : vector<8x256xf32>
    %c255_i32_30 = arith.constant 255 : i32
    %64 = tpu.dynamic_rotate %50 by %c255_i32_30 dim 1 : vector<8x256xf32>, i32 -> vector<8x256xf32>
    %65 = vector.broadcast %11 : vector<1x256xf32> to vector<8x256xf32>
    %66 = arith.mulf %64, %65 : vector<8x256xf32>
    %c241_i32_31 = arith.constant 241 : i32
    %67 = tpu.dynamic_rotate %50 by %c241_i32_31 dim 1 : vector<8x256xf32>, i32 -> vector<8x256xf32>
    %68 = vector.broadcast %13 : vector<1x256xf32> to vector<8x256xf32>
    %69 = arith.mulf %67, %68 : vector<8x256xf32>
    %c240_i32_32 = arith.constant 240 : i32
    %70 = tpu.dynamic_rotate %50 by %c240_i32_32 dim 1 : vector<8x256xf32>, i32 -> vector<8x256xf32>
    %71 = vector.broadcast %15 : vector<1x256xf32> to vector<8x256xf32>
    %72 = arith.mulf %70, %71 : vector<8x256xf32>
    %c239_i32_33 = arith.constant 239 : i32
    %73 = tpu.dynamic_rotate %50 by %c239_i32_33 dim 1 : vector<8x256xf32>, i32 -> vector<8x256xf32>
    %74 = vector.broadcast %17 : vector<1x256xf32> to vector<8x256xf32>
    %75 = arith.mulf %73, %74 : vector<8x256xf32>
    %76 = tpu.concatenate %54, %57, %60, %63, %50, %66, %69, %72, %75 in 0 : vector<8x256xf32>, vector<8x256xf32>, vector<8x256xf32>, vector<8x256xf32>, vector<8x256xf32>, vector<8x256xf32>, vector<8x256xf32>, vector<8x256xf32>, vector<8x256xf32> -> vector<72x256xf32>
    %77 = arith.truncf %76 : vector<72x256xf32> to vector<72x256xbf16>
    %cst_34 = arith.constant dense<0.000000e+00> : vector<8x256xf32>
    %78 = tpu.matmul %51, %77, %cst_34 {dimension_numbers = #tpu.dot_dimension_numbers<[1], [0], [0], [1], [0, 0, 1, 1], [], []>} : vector<8x72xbf16>, vector<72x256xbf16>, vector<8x256xf32> -> vector<8x256xf32>
    %c0_35 = arith.constant 0 : index
    %c0_36 = arith.constant 0 : index
    %79 = vector.load %arg6[%c0_35, %c0_36] : memref<8x1xf32, #tpu.memory_space<vmem>>, vector<8x1xf32>
    %80 = vector.broadcast %79 : vector<8x1xf32> to vector<8x256xf32>
    %81 = arith.addf %78, %80 : vector<8x256xf32>
    %c0_37 = arith.constant 0 : index
    %c0_38 = arith.constant 0 : index
    %82 = vector.load %arg7[%c0_37, %c0_38] : memref<8x8xbf16, #tpu.memory_space<vmem>>, vector<8x8xbf16>
    %83 = arith.truncf %1 : vector<8x256xf32> to vector<8x256xbf16>
    %cst_39 = arith.constant dense<0.000000e+00> : vector<8x256xf32>
    %84 = tpu.matmul %82, %83, %cst_39 {dimension_numbers = #tpu.dot_dimension_numbers<[1], [0], [0], [1], [0, 0, 1, 1], [], []>} : vector<8x8xbf16>, vector<8x256xbf16>, vector<8x256xf32> -> vector<8x256xf32>
    %c0_40 = arith.constant 0 : index
    %c0_41 = arith.constant 0 : index
    %85 = vector.load %arg8[%c0_40, %c0_41] : memref<8x1xf32, #tpu.memory_space<vmem>>, vector<8x1xf32>
    %86 = vector.broadcast %85 : vector<8x1xf32> to vector<8x256xf32>
    %87 = arith.addf %84, %86 : vector<8x256xf32>
    %88 = arith.addf %81, %87 : vector<8x256xf32>
    %cst_42 = arith.constant 0.000000e+00 : f32
    %89 = vector.broadcast %cst_42 : f32 to vector<8x256xf32>
    %90 = arith.maximumf %88, %89 : vector<8x256xf32>
    %c0_43 = arith.constant 0 : index
    %c0_44 = arith.constant 0 : index
    %c0_45 = arith.constant 0 : index
    %91 = vector.load %arg9[%c0_43, %c0_44, %c0_45] : memref<1x8x256xf32, #tpu.memory_space<vmem>>, vector<1x8x256xf32>
    %92 = vector.shape_cast %91 : vector<1x8x256xf32> to vector<8x256xf32>
    %93 = vector.shape_cast %90 : vector<8x256xf32> to vector<1x8x256xf32>
    tpu.vector_store %arg9[%c0_43, %c0_44, %c0_45], %93 {strides = array<i32>} : memref<1x8x256xf32, #tpu.memory_space<vmem>>, vector<1x8x256xf32>,
    return
  }
  func.func @transform_0(%arg0: i32) -> (i32, i32, i32) {
    %c0_i32 = arith.constant 0 : i32
    %c0_i32_0 = arith.constant 0 : i32
    %c0_i32_1 = arith.constant 0 : i32
    return %arg0, %c0_i32, %c0_i32_0 : i32, i32, i32
  }
  func.func @transform_1(%arg0: i32) -> (i32, i32, i32) {
    %c0_i32 = arith.constant 0 : i32
    %c0_i32_0 = arith.constant 0 : i32
    %c0_i32_1 = arith.constant 0 : i32
    %c0_i32_2 = arith.constant 0 : i32
    return %c0_i32, %c0_i32_0, %c0_i32_1 : i32, i32, i32
  }
  func.func @transform_2(%arg0: i32) -> (i32, i32) {
    %c0_i32 = arith.constant 0 : i32
    %c0_i32_0 = arith.constant 0 : i32
    %c0_i32_1 = arith.constant 0 : i32
    return %c0_i32, %c0_i32_0 : i32, i32
  }
  func.func @transform_3(%arg0: i32) -> (i32, i32) {
    %c0_i32 = arith.constant 0 : i32
    %c0_i32_0 = arith.constant 0 : i32
    %c0_i32_1 = arith.constant 0 : i32
    return %c0_i32, %c0_i32_0 : i32, i32
  }
  func.func @transform_4(%arg0: i32) -> (i32, i32) {
    %c0_i32 = arith.constant 0 : i32
    %c0_i32_0 = arith.constant 0 : i32
    %c0_i32_1 = arith.constant 0 : i32
    return %c0_i32, %c0_i32_0 : i32, i32
  }
  func.func @transform_5(%arg0: i32) -> (i32, i32) {
    %c0_i32 = arith.constant 0 : i32
    %c0_i32_0 = arith.constant 0 : i32
    %c0_i32_1 = arith.constant 0 : i32
    return %c0_i32, %c0_i32_0 : i32, i32
  }
  func.func @transform_6(%arg0: i32) -> (i32, i32) {
    %c0_i32 = arith.constant 0 : i32
    %c0_i32_0 = arith.constant 0 : i32
    %c0_i32_1 = arith.constant 0 : i32
    return %c0_i32, %c0_i32_0 : i32, i32
  }
  func.func @transform_7(%arg0: i32) -> (i32, i32) {
    %c0_i32 = arith.constant 0 : i32
    %c0_i32_0 = arith.constant 0 : i32
    %c0_i32_1 = arith.constant 0 : i32
    return %c0_i32, %c0_i32_0 : i32, i32
  }
  func.func @transform_8(%arg0: i32) -> (i32, i32, i32) {
    %c0_i32 = arith.constant 0 : i32
    %c0_i32_0 = arith.constant 0 : i32
    %c0_i32_1 = arith.constant 0 : i32
    return %arg0, %c0_i32, %c0_i32_0 : i32, i32, i32
  }
}

</mosaic_0001>

<bundles_post_ra>
// kernel: tpu_custom_call.1
= control target key start
LH: loop header
LB: loop body
LE: loop exit
PB: predicated region body
PF: predicated region fallthrough
CT: control target
= control target key end

     0   :  { %13 = vsyncpa [#allocation3], 0  ;;  %s1550_s0 = inlined_call_operand.hbm [shape: f32[2,8,256], index: 0, kind: input, shape index: {}]   ;;  %s1551_s1 = inlined_call_operand.vmem [shape: f32[9,1,256], index: 1, kind: input, shape index: {}]   ;;  %s1552_s2 = inlined_call_operand.vmem [shape: bf16[8,72], index: 2, kind: input, shape index: {}]   ;;  %s1553_s3 = inlined_call_operand.vmem [shape: f32[8,1], index: 3, kind: input, shape index: {}]   ;;  %s1554_s4 = inlined_call_operand.vmem [shape: bf16[8,72], index: 4, kind: input, shape index: {}]   ;;  %s1555_s5 = inlined_call_operand.vmem [shape: f32[8,1], index: 5, kind: input, shape index: {}]   ;;  %s1556_s6 = inlined_call_operand.vmem [shape: bf16[8,8], index: 6, kind: input, shape index: {}]   ;;  %s1557_s7 = inlined_call_operand.vmem [shape: f32[8,1], index: 7, kind: input, shape index: {}]   ;;  %s1558_s8 = inlined_call_operand.hbm [shape: f32[2,8,256], index: 8, kind: output, shape index: {}]  }
   0x1   :  { %15 = vsyncpa [#allocation3 + $0x1], 0 }
   0x2   :  { %16 = vsyncpa [#allocation4], 0 }
   0x3   :  { %18 = vsyncpa [#allocation4 + $0x1], 0  ;;  %s1103_s27 = smov 0   ;;  %s1105_s28 = smov 0  }
   0x4   :  { %s1107_s29 = smov 0   ;;  %s1109_s30 = smov 0  }
   0x5 LB: > { %s1124_s9 = sadd.s32 4294967295, %s1045_s30   ;;  %s855_s10 = sadd.s32 4294967294, %s1045_s30   ;;  %s1045_s30 = sphi %s1109_s30, %s1581_s30   ;;  %s1041_s29 = sphi %s1107_s29, %s1580_s29   ;;  %s1037_s28 = sphi %s1105_s28, %s1579_s28   ;;  %s1033_s27 = sphi %s1103_s27, %s1578_s27  }
   0x6   : > { %s1128_s11 = sadd.s32 1, %s1045_s30   ;;  %s31_s12 = sadd.s32 1, %s1041_s29 }
   0x7   : > { %s28_s13 = ssub.s32 %s1045_s30, %s1128_s11  ;;  %p38_p0 = scmp.ne.s32.totalorder %s1041_s29, %s1037_s28 }
   0x8   : > { %p29_p1 = scmp.eq.s32.totalorder %s28_s13, 0  ;;  %p39_p2 = scmp.eq.s32.totalorder %s1045_s30, 0 }
   0x9   : > { %p44_p3 = scmp.ne.s32.totalorder %s1037_s28, %s1033_s27  ;;  %p45_p4 = scmp.eq.s32.totalorder %s1124_s9, 0 }
   0xa   : > { %s1140_s14 = scalar_select %p29_p1, %s1041_s29, %s31_s12  }
   0xb   : > { %p1142_p5 = por %p39_p2, %p38_p0  ;;  %p1146_p6 = por %p45_p4, %p44_p3 }
   0xc   : > { %p215_p7 = scmp.eq.s32.totalorder %s1124_s9, 1  ;;  %p221_p8 = scmp.eq.s32.totalorder %s855_s10, 1 }
   0xd   : > { %p904_p10 = scmp.lt.s32.totalorder %s1045_s30, 2  ;;  %s262_s19 = sand.u32 1, %s1041_s29  }
   0xe   : > { %p1153_p11 = por %p215_p7, %p38_p0  ;;  %p1157_p12 = por %p221_p8, %p44_p3 }
   0xf   : > { %s882_s20 = sshll.u32 %s1045_s30, 8  ;;  %s858_s21 = sshll.u32 %s262_s19, 4 }
  0x10   : > { %s1567_s17 = scalar_select %p1153_p11, 1, 0 }
  0x11   : > { %s1568_s18 = scalar_select %p1157_p12, 1, 0 }
  0x12   : > { %s1166_s24 = scalar_lea.hbm %s1550_s0, %s882_s20  ;;  %s266_s25 = scalar_lea.vmem [#allocation2], %s858_s21 }
  0x13   : > { %s274_s26 = sshll.u32 %s266_s25, 4  ;;  %p1170_p13 = pnand %p904_p10, %p1142_p5  ;;  %s1174_s26 = int_to_ptr.vmem [resolvable:$true] %s274_s26 }
  0x14   : > { %s263_s12 = scalar_lea.sflag [#allocation3], %s262_s19  ;;  %s949_s13 = scalar_lea.hbm %s1166_s24, 256 }
  0x15   : > { %p950_p2 = scmp.ne.s32.totalorder %s1166_s24, %s949_s13  ;;  %p951_p3 = pneg %p1170_p13 }
  0x16   : > { %s954_s21 = scalar_lea.hbm %s1550_s0, 512  ;;  %p955_p5 = scmp.lt.u32.totalorder %s1166_s24, %s1550_s0 }
  0x17   : > { %p952_p4 = pnand %p951_p3, %p950_p2  ;;  %p956_p8 = scmp.lt.u32.totalorder %s954_s21, %s949_s13 }
  0x18   : > { %p958_p9 = scmp.lt.u32.totalorder %s949_s13, %s1166_s24 }
  0x19   : > { %p953_p7 = pneg %p952_p4  ;;  %p957_p10 = por %p956_p8, %p955_p5 }
  0x1b   : > { %p959_p0 = por %p958_p9, %p957_p10 }
  0x1d   : > { %p960_p1 = pnand %p959_p0, %p953_p7 }
  0x1f   : > { %963 = shalt.err (!%p960_p1)
}
  0x20   : > { %s964_s19 = scalar_lea.vmem %s1174_s26, 256  ;;  %s1047_s25 = smov [#allocation2]  }
  0x21   : > { %p965_p2 = scmp.ne.s32.totalorder %s1174_s26, %s964_s19  ;;  %s969_s15 = sshll.u32 %s1047_s25, 4  ;;  %s970_s15 = int_to_ptr.vmem [resolvable:$false] %s969_s15 }
  0x22   : > { %s971_s20 = scalar_lea.vmem %s970_s15, 512  ;;  %p972_p11 = scmp.lt.s32.totalorder %s1174_s26, %s970_s15 }
  0x23   : > { %p967_p4 = pnand %p965_p2, %p951_p3  ;;  %p973_p5 = scmp.lt.s32.totalorder %s971_s20, %s964_s19 }
  0x25   : > { %p968_p12 = pneg %p967_p4  ;;  %p974_p8 = por %p973_p5, %p972_p11 }
  0x27   : > { %p975_p9 = pnand %p974_p8, %p968_p12 }
  0x29   : > { %978 = shalt.err (!%p975_p9)
}
  0x2a   : > { %899 = dma.hbm_to_vmem [thread:$0]  (!%p1170_p13), %s1166_s24, 256, %s1174_s26, %s263_s12  }
  0x2b   : > { %p1570_p0 = scmp.lt.s32.totalorder %s1045_s30, 3  ;;  %p1571_p1 = scmp.ge.s32.totalorder %s1045_s30, 1 }
  0x2d   : > { %p280_p3 = pnand %p1571_p1, %p1570_p0 }
  0x2e   : > { %s1208_s13 = sand.u32 (!%p280_p3), 1, %s1037_s28  }
  0x2f   : > { %283 = sbr.rel (%p280_p3) target bundleno = 823 (0x337), region = 52  ;;  %s1560_s21 = sshll.u32 (!%p280_p3), %s1208_s13, 4 }
  0x30   : > { %s286_s22 = scalar_lea.sflag (!%p280_p3), [#allocation3], %s1208_s13  ;;  %s289_s10 = scalar_lea.vmem (!%p280_p3), [#allocation2], %s1560_s21 }
  0x36   : > { %1024 = dma.done.wait (%p1146_p6), %s286_s22, 256  }
  0x37   : > { %1026 = vsyncadd (%p1146_p6), %s286_s22, 4294967040  ;;  %v1218_v0 = vld [vmem:[%s289_s10] sm:$0xff]  ;;  %s1048_s24 = smov 16   ;;  %s1049_s26 = smov 17   ;;  %v1224_v1 = vld [vmem:[%s289_s10 + $0x8] sm:$0xff]  ;;  %v1054_v2 = vmov 0   ;;  %v345_v4 = vlaneseq }
  0x38   : > { %363 = vrot.lane.b32.xlu1 %v1218_v0, %s1048_s24  ;;  %341 = vrot.lane.b32.xlu0 %v1218_v0, %s1049_s26  ;;  %s1050_s16 = smov 15   ;;  %s1051_s12 = smov 1   ;;  %v513_v3 = vld [vmem:[%s1553_s3] sm:$0xff]  ;;  %v867_v37 = vld [vmem:[%s1551_s1 + $0xa] sm:$0x3]  ;;  %vm523_vm8 = vcmask 1043456  }
  0x39   : > { %s1052_s23 = smov 127   ;;  %s1563_s19 = smov 113   ;;  %562 = vmatprep.mubr.bf16.mxu0 %v1054_v2  ;;  %947 = vset.pattern.permute.xlu0 %v1054_v2  ;;  %v352_v5 = vshrl.u32 %v345_v4, 7  ;;  %v1261_v6 = vand.u32 127, %v345_v4  ;;  %v864_v9 = vld [vmem:[%s1551_s1 + $0x2] sm:$0x3] }
  0x3a   : > { %948 = vset.pattern.permute.xlu1 %v1054_v2  ;;  %695 = vmatprep.mubr.bf16.mxu1 %v1054_v2  ;;  %s1561_s25 = smov 112   ;;  %s1056_s15 = smov 111   ;;  %v325_v10 = vld [vmem:[%s1551_s1] sm:$0x3]  ;;  %v865_v27 = vld [vmem:[%s1551_s1 + $0x4] sm:$0x3] }
  0x3b   : > { %v1263_v7 = vsub.s32 0, %v352_v5  ;;  %v1265_v8 = vsub.s32 1, %v352_v5  ;;  %vm367_vm0 = vcmp.lt.s32.totalorder %v1261_v6, 16  ;;  %vm347_vm1 = vcmp.lt.s32.totalorder %v1261_v6, 17  ;;  %v866_v28 = vld [vmem:[%s1551_s1 + $0x6] sm:$0x3] }
  0x3c   : > { %365 = vrot.lane.b32.xlu1 %v1224_v1, %s1048_s24  ;;  %343 = vrot.lane.b32.xlu0 %v1224_v1, %s1049_s26  ;;  %vm387_vm2 = vcmp.lt.s32.totalorder %v1261_v6, 15  ;;  %vm407_vm3 = vcmp.lt.s32.totalorder %v1261_v6, 1  ;;  %vm427_vm4 = vcmp.lt.s32.totalorder %v1261_v6, 127  ;;  %v868_v58 = vld [vmem:[%s1551_s1 + $0xc] sm:$0x3]  ;;  %vm447_vm5 = vcmp.lt.s32.totalorder %v1261_v6, 113 }
  0x3d   : > { %v1276_v13 = vrot.slane %v864_v9, %v1263_v7  ;;  %v1279_v14 = vrot.slane %v325_v10, %v1263_v7  ;;  %v1282_v15 = vrot.slane %v325_v10, %v1265_v8  ;;  %v1285_v16 = vrot.slane %v864_v9, %v1265_v8  ;;  %v869_v59 = vld [vmem:[%s1551_s1 + $0xe] sm:$0x3]  ;;  %v870_v10 = vld [vmem:[%s1551_s1 + $0x10] sm:$0x3]  ;;  %s1573_s20 = smov 112   ;;  %s883_s21 = sshll.u32 %s1124_s9, 8 }
  0x3e   : > { %v1308_v33 = vrot.slane %v865_v27, %v1263_v7  ;;  %v1311_v34 = vrot.slane %v865_v27, %v1265_v8  ;;  %v1314_v35 = vrot.slane %v866_v28, %v1263_v7  ;;  %v1317_v36 = vrot.slane %v866_v28, %v1265_v8  ;;  %s771_s9 = scalar_lea.sflag [#allocation4], %s1208_s13  ;;  %p1575_p11 = scmp.ne.s32.totalorder %s1567_s17, 0 }
  0x3f   : > { %v1332_v44 = vrot.slane %v867_v37, %v1263_v7  ;;  %v1335_v45 = vrot.slane %v867_v37, %v1265_v8  ;;  %v1360_v4 = vrot.slane %v868_v58, %v1265_v8  ;;  %vm467_vm6 = vcmp.lt.s32.totalorder %v1261_v6, 112 }
  0x40   : > { %385 = vrot.lane.b32.xlu1 %v1224_v1, %s1050_s16  ;;  %383 = vrot.lane.b32.xlu0 %v1218_v0, %s1050_s16  ;;  %v1364_v5 = vrot.slane %v869_v59, %v1263_v7  ;;  %v1367_v9 = vrot.slane %v869_v59, %v1265_v8  ;;  %vm487_vm7 = vcmp.lt.s32.totalorder %v1261_v6, 111  ;;  %vm519_vm9 = vcmask 588800   ;;  %v573_v6 = vld [vmem:[%s1554_s4] sm:$0xf] }
  0x41   : > { %vm713_vm10 = vcmask 64512  }
  0x44   : > { %405 = vrot.lane.b32.xlu1 %v1224_v1, %s1051_s12  ;;  %403 = vrot.lane.b32.xlu0 %v1218_v0, %s1051_s12 }
  0x48   : > { %425 = vrot.lane.b32.xlu1 %v1224_v1, %s1052_s23  ;;  %423 = vrot.lane.b32.xlu0 %v1218_v0, %s1052_s23 }
  0x4c   : > { %445 = vrot.lane.b32.xlu1 %v1224_v1, %s1563_s19  ;;  %443 = vrot.lane.b32.xlu0 %v1218_v0, %s1563_s19  ;;  %s1574_s19 = sshll.u32 %s1208_s13, 4 }
  0x50   : > { %465 = vrot.lane.b32.xlu1 %v1224_v1, %s1561_s25  ;;  %463 = vrot.lane.b32.xlu0 %v1218_v0, %s1561_s25  ;;  %s1572_s25 = smov 113  }
  0x54   : > { %485 = vrot.lane.b32.xlu1 %v1224_v1, %s1056_s15  ;;  %483 = vrot.lane.b32.xlu0 %v1218_v0, %s1056_s15 }
  0x58   : > { %516 = vperm.xlu0 %947, %v513_v3   ;;  %v1357_v3 = vrot.slane %v868_v58, %v1263_v7 }
  0xaa   : > { %v364_v11 = vpop.permute.xlu1 %363  ;;  %v342_v12 = vpop.permute.xlu0 %341 }
  0xae   : > { %v366_v17 = vpop.permute.xlu1 %365  ;;  %v344_v18 = vpop.permute.xlu0 %343 }
  0xaf   : > { %v368_v19 = vsel %vm367_vm0, %v364_v11, %v366_v17  ;;  %v369_v20 = vsel %vm367_vm0, %v366_v17, %v364_v11  ;;  %v348_v21 = vsel %vm347_vm1, %v342_v12, %v344_v18  ;;  %v349_v22 = vsel %vm347_vm1, %v344_v18, %v342_v12 }
  0xb0   : > { %v381_v23 = vmul.f32 %v1276_v13, %v369_v20  ;;  %v361_v24 = vmul.f32 %v1279_v14, %v349_v22  ;;  %v362_v25 = vmul.f32 %v1282_v15, %v348_v21  ;;  %v382_v26 = vmul.f32 %v1285_v16, %v368_v19 }
  0xb1   : > { %v1382_v21 = vrot.slane %v870_v10, %v1263_v7  ;;  %v1385_v22 = vrot.slane %v870_v10, %v1265_v8 }
  0xb2   : > { %v386_v29 = vpop.permute.xlu1 %385  ;;  %v384_v30 = vpop.permute.xlu0 %383  ;;  %v504_v31 = vpack.c.bf16 %v382_v26, %v362_v25  ;;  %v503_v32 = vpack.c.bf16 %v381_v23, %v361_v24 }
  0xb3   : > { %v388_v38 = vsel %vm387_vm2, %v384_v30, %v386_v29  ;;  %v389_v39 = vsel %vm387_vm2, %v386_v29, %v384_v30 }
  0xb4   : > { %530 = vmatprep.subr.bf16.mxu0 %v504_v31  ;;  %v401_v46 = vmul.f32 %v1308_v33, %v389_v39  ;;  %v402_v47 = vmul.f32 %v1311_v34, %v388_v38 }
  0xb5   : > { %531 = vmatpush1.bf16.msra.mxu0 %v503_v32 }
  0xb6   : > { %v406_v40 = vpop.permute.xlu1 %405  ;;  %v404_v41 = vpop.permute.xlu0 %403 }
  0xb7   : > { %v408_v42 = vsel %vm407_vm3, %v404_v41, %v406_v40  ;;  %v409_v43 = vsel %vm407_vm3, %v406_v40, %v404_v41  ;;  %v340_v40 = vld [vmem:[%s1552_s2] sm:$0xf] }
  0xb8   : > { %v421_v48 = vmul.f32 %v1314_v35, %v409_v43  ;;  %v422_v49 = vmul.f32 %v1317_v36, %v408_v42 }
  0xba   : > { %v426_v50 = vpop.permute.xlu1 %425  ;;  %v424_v51 = vpop.permute.xlu0 %423  ;;  %v506_v52 = vpack.c.bf16 %v422_v49, %v402_v47  ;;  %v505_v53 = vpack.c.bf16 %v421_v48, %v401_v46 }
  0xbb   : > { %v428_v54 = vsel %vm427_vm4, %v424_v51, %v426_v50  ;;  %v429_v55 = vsel %vm427_vm4, %v426_v50, %v424_v51 }
  0xbc   : > { %v441_v56 = vmul.f32 %v1332_v44, %v428_v54  ;;  %v442_v57 = vmul.f32 %v1335_v45, %v429_v55  ;;  %532 = vmatprep.subr.bf16.mxu0 %v506_v52  ;;  %v648_v52 = vld [vmem:[%s1555_s5] sm:$0xff] }
  0xbd   : > { %533 = vmatpush1.bf16.msra.mxu0 %v505_v53  ;;  %v707_v53 = vld [vmem:[%s1557_s7] sm:$0xff] }
  0xbe   : > { %v446_v60 = vpop.permute.xlu1 %445  ;;  %v444_v61 = vpop.permute.xlu0 %443  ;;  %v508_v62 = vpack.c.bf16 %v442_v57, %v1224_v1  ;;  %v507_v63 = vpack.c.bf16 %v441_v56, %v1218_v0 }
  0xbf   : > { %v448_v11 = vsel %vm447_vm5, %v444_v61, %v446_v60  ;;  %v449_v12 = vsel %vm447_vm5, %v446_v60, %v444_v61 }
  0xc0   : > { %534 = vmatprep.subr.bf16.mxu0 %v508_v62  ;;  %v461_v23 = vmul.f32 %v1357_v3, %v448_v11  ;;  %v462_v24 = vmul.f32 %v1360_v4, %v449_v12 }
  0xc1   : > { %535 = vmatpush1.bf16.msra.mxu0 %v507_v63 }
  0xc2   : > { %v466_v17 = vpop.permute.xlu1 %465  ;;  %v464_v18 = vpop.permute.xlu0 %463 }
  0xc3   : > { %v468_v19 = vsel %vm467_vm6, %v464_v18, %v466_v17  ;;  %v469_v20 = vsel %vm467_vm6, %v466_v17, %v464_v18 }
  0xc4   : > { %v481_v25 = vmul.f32 %v1364_v5, %v468_v19  ;;  %v482_v26 = vmul.f32 %v1367_v9, %v469_v20 }
  0xc6   : > { %v486_v27 = vpop.permute.xlu1 %485  ;;  %v484_v28 = vpop.permute.xlu0 %483  ;;  %v510_v29 = vpack.c.bf16 %v482_v26, %v462_v24  ;;  %v509_v30 = vpack.c.bf16 %v481_v25, %v461_v23 }
  0xc7   : > { %v488_v31 = vsel %vm487_vm7, %v484_v28, %v486_v27  ;;  %v489_v7 = vsel %vm487_vm7, %v486_v27, %v484_v28 }
  0xc8   : > { %v501_v8 = vmul.f32 %v1382_v21, %v488_v31  ;;  %v502_v32 = vmul.f32 %v1385_v22, %v489_v7  ;;  %536 = vmatprep.subr.bf16.mxu0 %v510_v29 }
  0xc9   : > { %537 = vmatpush1.bf16.msra.mxu0 %v509_v30 }
  0xca   : > { %v511_v37 = vpack.c.bf16 %v501_v8, %v501_v8  ;;  %v512_v38 = vpack.c.bf16 %v502_v32, %v502_v32 }
  0xcc   : > { %871 = vmatprep.subr.msk.bf16.mxu0 %vm523_vm8, %v512_v38  ;;  %v525_v39 = vsel %vm523_vm8, %v511_v37, 0 }
  0xcd   : > { %539 = vmatpush1.bf16.msra.mxu0 %v525_v39 }
  0xd0   : > { %872 = vmatmul.mubr.msk.bf16.vlgmr.msra.gmra.mrb[0].mxu0 %vm519_vm9, %v340_v40 }
  0xd7   : > { %v517_v41 = vpop.permute.xlu0 %516 }
 0x1a3   : > { %v564_v42 = vpop.f32.mrb[0].mxu0 }
 0x1a4   : > { %v565_v43 = vadd.f32 %v564_v42, %v517_v41  ;;  %v566_v46 = vpop.f32.mrb[1].mxu0 }
 0x1a5   : > { %v568_v47 = vpop.f32.mrb[2].mxu0  ;;  %v567_v49 = vadd.f32 %v566_v46, %v517_v41 }
 0x1a6   : > { %v1403_v48 = vmax.f32 %v565_v43, 0.0  ;;  %v569_v50 = vpop.f32.mrb[3].mxu0 }
 0x1a7   : > { %v572_v51 = vmax.f32 %v567_v49, 0.0 }
 0x1a8   : > { %582 = vrot.lane.b32.xlu0 %v1403_v48, %s1048_s24  ;;  %574 = vrot.lane.b32.xlu1 %v1403_v48, %s1049_s26 }
 0x1ac   : > { %590 = vrot.lane.b32.xlu0 %v1403_v48, %s1050_s16  ;;  %576 = vrot.lane.b32.xlu1 %v572_v51, %s1049_s26 }
 0x1b0   : > { %598 = vrot.lane.b32.xlu0 %v1403_v48, %s1051_s12  ;;  %584 = vrot.lane.b32.xlu1 %v572_v51, %s1048_s24 }
 0x1b4   : > { %606 = vrot.lane.b32.xlu0 %v1403_v48, %s1052_s23  ;;  %592 = vrot.lane.b32.xlu1 %v572_v51, %s1050_s16  ;;  %s1506_s16 = scalar_lea.hbm %s1558_s8, %s883_s21 }
 0x1b8   : > { %614 = vrot.lane.b32.xlu0 %v1403_v48, %s1572_s25  ;;  %600 = vrot.lane.b32.xlu1 %v572_v51, %s1051_s12 }
 0x1bc   : > { %622 = vrot.lane.b32.xlu0 %v1403_v48, %s1573_s20  ;;  %608 = vrot.lane.b32.xlu1 %v572_v51, %s1052_s23  ;;  %s1057_s23 = smov [#allocation5]  }
 0x1c0   : > { %630 = vrot.lane.b32.xlu0 %v1403_v48, %s1056_s15  ;;  %616 = vrot.lane.b32.xlu1 %v572_v51, %s1572_s25  ;;  %s321_s25 = scalar_lea.vmem [#allocation5], %s1574_s19 }
 0x1c4   : > { %651 = vperm.xlu0 %947, %v648_v52   ;;  %624 = vrot.lane.b32.xlu1 %v572_v51, %s1573_s20  ;;  %s785_s20 = sshll.u32 %s321_s25, 4  ;;  %s1508_s20 = int_to_ptr.vmem [resolvable:$true] %s785_s20 }
 0x1c5   : > { %s979_s12 = scalar_lea.vmem %s1508_s20, 256 }
 0x1c6   : > { %p980_p6 = scmp.ne.s32.totalorder %s1508_s20, %s979_s12 }
 0x1c8   : > { %632 = vrot.lane.b32.xlu1 %v572_v51, %s1056_s15  ;;  %p981_p12 = pnand %p980_p6, %p1575_p11  ;;  %s983_s15 = sshll.u32 %s1057_s23, 4  ;;  %s984_s15 = int_to_ptr.vmem [resolvable:$false] %s983_s15 }
 0x1c9   : > { %s985_s22 = scalar_lea.vmem %s984_s15, 512  ;;  %p986_p7 = scmp.lt.s32.totalorder %s1508_s20, %s984_s15 }
 0x1ca   : > { %p982_p13 = pneg %p981_p12  ;;  %p987_p10 = scmp.lt.s32.totalorder %s985_s22, %s979_s12 }
 0x1cc   : > { %710 = vperm.xlu1 %948, %v707_v53   ;;  %p988_p2 = por %p987_p10, %p986_p7 }
 0x1ce   : > { %p989_p4 = pnand %p988_p2, %p982_p13 }
 0x21a   : > { %v583_v54 = vpop.permute.xlu0 %582  ;;  %v575_v55 = vpop.permute.xlu1 %574 }
 0x21e   : > { %v591_v56 = vpop.permute.xlu0 %590  ;;  %v577_v57 = vpop.permute.xlu1 %576 }
 0x21f   : > { %v578_v58 = vsel %vm347_vm1, %v575_v55, %v577_v57  ;;  %v579_v59 = vsel %vm347_vm1, %v577_v57, %v575_v55  ;;  %v705_v55 = vpack.c.bf16 %v1218_v0, %v1218_v0  ;;  %v704_v0 = vld [vmem:[%s1556_s6] sm:$0xf] }
 0x220   : > { %v580_v10 = vmul.f32 %v579_v59, %v1279_v14  ;;  %v581_v12 = vmul.f32 %v578_v58, %v1282_v15 }
 0x222   : > { %v599_v60 = vpop.permute.xlu0 %598  ;;  %v585_v61 = vpop.permute.xlu1 %584 }
 0x223   : > { %v586_v62 = vsel %vm367_vm0, %v583_v54, %v585_v61  ;;  %v587_v63 = vsel %vm367_vm0, %v585_v61, %v583_v54 }
 0x224   : > { %v588_v11 = vmul.f32 %v587_v63, %v1276_v13  ;;  %v589_v17 = vmul.f32 %v586_v62, %v1285_v16 }
 0x226   : > { %v593_v18 = vpop.permute.xlu1 %592  ;;  %v639_v19 = vpack.c.bf16 %v589_v17, %v581_v12  ;;  %v638_v20 = vpack.c.bf16 %v588_v11, %v580_v10  ;;  %v607_v23 = vpop.permute.xlu0 %606 }
 0x227   : > { %v594_v24 = vsel %vm387_vm2, %v591_v56, %v593_v18  ;;  %v595_v25 = vsel %vm387_vm2, %v593_v18, %v591_v56 }
 0x228   : > { %663 = vmatprep.subr.bf16.mxu1 %v639_v19  ;;  %v596_v15 = vmul.f32 %v595_v25, %v1308_v33  ;;  %v597_v16 = vmul.f32 %v594_v24, %v1311_v34 }
 0x229   : > { %664 = vmatpush1.bf16.msra.mxu1 %v638_v20 }
 0x22a   : > { %v601_v26 = vpop.permute.xlu1 %600  ;;  %v615_v29 = vpop.permute.xlu0 %614 }
 0x22b   : > { %v602_v13 = vsel %vm407_vm3, %v599_v60, %v601_v26  ;;  %v603_v14 = vsel %vm407_vm3, %v601_v26, %v599_v60 }
 0x22c   : > { %v604_v27 = vmul.f32 %v603_v14, %v1314_v35  ;;  %v605_v28 = vmul.f32 %v602_v13, %v1317_v36 }
 0x22e   : > { %v609_v30 = vpop.permute.xlu1 %608  ;;  %v641_v31 = vpack.c.bf16 %v605_v28, %v597_v16  ;;  %v640_v7 = vpack.c.bf16 %v604_v27, %v596_v15  ;;  %v623_v38 = vpop.permute.xlu0 %622 }
 0x22f   : > { %v610_v8 = vsel %vm427_vm4, %v607_v23, %v609_v30  ;;  %v611_v32 = vsel %vm427_vm4, %v609_v30, %v607_v23 }
 0x230   : > { %v612_v37 = vmul.f32 %v610_v8, %v1332_v44  ;;  %v613_v33 = vmul.f32 %v611_v32, %v1335_v45  ;;  %665 = vmatprep.subr.bf16.mxu1 %v641_v31 }
 0x231   : > { %666 = vmatpush1.bf16.msra.mxu1 %v640_v7 }
 0x232   : > { %v617_v34 = vpop.permute.xlu1 %616  ;;  %v643_v35 = vpack.c.bf16 %v613_v33, %v572_v51  ;;  %v642_v36 = vpack.c.bf16 %v612_v37, %v1403_v48  ;;  %v631_v48 = vpop.permute.xlu0 %630 }
 0x233   : > { %v618_v39 = vsel %vm447_vm5, %v615_v29, %v617_v34  ;;  %v619_v40 = vsel %vm447_vm5, %v617_v34, %v615_v29 }
 0x234   : > { %667 = vmatprep.subr.bf16.mxu1 %v643_v35  ;;  %v620_v42 = vmul.f32 %v618_v39, %v1357_v3  ;;  %v621_v43 = vmul.f32 %v619_v40, %v1360_v4 }
 0x235   : > { %668 = vmatpush1.bf16.msra.mxu1 %v642_v36 }
 0x236   : > { %v625_v41 = vpop.permute.xlu1 %624 }
 0x237   : > { %v626_v44 = vsel %vm467_vm6, %v623_v38, %v625_v41  ;;  %v627_v45 = vsel %vm467_vm6, %v625_v41, %v623_v38 }
 0x238   : > { %v628_v46 = vmul.f32 %v626_v44, %v1364_v5  ;;  %v629_v47 = vmul.f32 %v627_v45, %v1367_v9  ;;  %v706_v9 = vpack.c.bf16 %v1224_v1, %v1224_v1 }
 0x23a   : > { %v633_v49 = vpop.permute.xlu1 %632  ;;  %v645_v50 = vpack.c.bf16 %v629_v47, %v621_v43  ;;  %v644_v51 = vpack.c.bf16 %v628_v46, %v620_v42 }
 0x23b   : > { %v634_v52 = vsel %vm487_vm7, %v631_v48, %v633_v49  ;;  %v635_v53 = vsel %vm487_vm7, %v633_v49, %v631_v48 }
 0x23c   : > { %v636_v54 = vmul.f32 %v634_v52, %v1382_v21  ;;  %v637_v3 = vmul.f32 %v635_v53, %v1385_v22  ;;  %669 = vmatprep.subr.bf16.mxu1 %v645_v50  ;;  %v718_v21 = vsel %vm523_vm8, %v705_v55, 0 }
 0x23d   : > { %670 = vmatpush1.bf16.msra.mxu1 %v644_v51 }
 0x23e   : > { %v646_v4 = vpack.c.bf16 %v636_v54, %v636_v54  ;;  %v647_v5 = vpack.c.bf16 %v637_v3, %v637_v3 }
 0x240   : > { %873 = vmatprep.subr.msk.bf16.mxu1 %vm523_vm8, %v647_v5  ;;  %v658_v56 = vsel %vm523_vm8, %v646_v4, 0 }
 0x241   : > { %672 = vmatpush1.bf16.msra.mxu1 %v658_v56 }
 0x242   : > { %875 = vmatprep.subr.msk.bf16.mxu1 %vm523_vm8, %v706_v9 }
 0x243   : > { %v652_v22 = vpop.permute.xlu0 %651 }
 0x244   : > { %874 = vmatmul.mubr.msk.bf16.vlgmr.msra.gmra.mrb[0].mxu1 %vm519_vm9, %v573_v6 }
 0x245   : > { %724 = vmatpush1.bf16.msra.mxu1 %v718_v21  ;;  %755 = vmatprep.mubr.bf16.mxu1 %v1054_v2 }
 0x24b   : > { %v711_v1 = vpop.permute.xlu1 %710 }
 0x24c   : > { %v884_v57 = vadd.f32 %v711_v1, %v652_v22 }
 0x250   : > { %876 = vmatmul.mubr.msk.bf16.vlgmr.msra.gmra.mrb[0].mxu1 %vm713_vm10, %v704_v0 }
 0x323   : > { %v757_v58 = vpop.f32.mrb[0].mxu1 }
 0x324   : > { %v885_v59 = vadd.f32 %v884_v57, %v757_v58  ;;  %v759_v60 = vpop.f32.mrb[1].mxu1 }
 0x325   : > { %v887_v61 = vadd.f32 %v884_v57, %v759_v60  ;;  %v761_v2 = vpop.f32.mrb[2].mxu1 }
 0x326   : > { %v766_v62 = vmax.f32 %v885_v59, 0.0  ;;  %v762_v63 = vpop.f32.mrb[3].mxu1 }
 0x327   : > { %v767_v10 = vmax.f32 %v887_v61, 0.0 }
 0x328   : > { %768 = vst [vmem:[%s321_s25] sm:$0xff] %v766_v62 }
 0x329   : > { %769 = vst [vmem:[%s321_s25 + $0x8] sm:$0xff] %v767_v10 }
 0x32a   : > { %992 = shalt.err (!%p989_p4)
}
 0x32b   : > { %s993_s13 = scalar_lea.hbm %s1506_s16, 256  ;;  %s997_s19 = scalar_lea.hbm %s1558_s8, 512 }
 0x32c   : > { %p994_p5 = scmp.ne.s32.totalorder %s1506_s16, %s993_s13  ;;  %p998_p0 = scmp.lt.u32.totalorder %s1506_s16, %s1558_s8 }
 0x32d   : > { %p999_p1 = scmp.lt.u32.totalorder %s997_s19, %s993_s13  ;;  %p1001_p6 = scmp.lt.u32.totalorder %s993_s13, %s1506_s16 }
 0x32e   : > { %p995_p8 = pnand %p994_p5, %p1575_p11 }
 0x32f   : > { %p1000_p3 = por %p999_p1, %p998_p0 }
 0x330   : > { %p996_p9 = pneg %p995_p8 }
 0x331   : > { %p1002_p12 = por %p1001_p6, %p1000_p3 }
 0x333   : > { %p1003_p13 = pnand %p1002_p12, %p996_p9 }
 0x335   : > { %1006 = shalt.err (!%p1003_p13)
}
 0x336   : > { %894 = dma.vmem_to_hbm [thread:$0]  (%p1575_p11), %s1508_s20, 256, %s1506_s16, %s771_s9  }
 0x337 PF: > { %s797_s26 = sand.u32 1, %s1033_s27   ;;  %p1576_p7 = scmp.ne.s32.totalorder %s1568_s18, 0 }
 0x338   : > { %p1577_p10 = scmp.ge.s32.totalorder %s1045_s30, 2  ;;  %s798_s12 = scalar_lea.sflag [#allocation4], %s797_s26 }
 0x33a   : > { %p901_p2 = pnand %p1577_p10, %p1576_p7 }
 0x33c   : > { %1028 = dma.done.wait (!%p901_p2), %s798_s12, 256  }
 0x33d   : > { %1030 = vsyncadd (!%p901_p2), %s798_s12, 4294967040  ;;  %p21_p4 = scmp.ge.s32.totalorder %s1128_s11, 4   ;;  %s1578_s27 = smov %s1037_s28 }
 0x33e   : > { %s1579_s28 = smov %s1041_s29  ;;  %s1580_s29 = smov %s1140_s14 }
 0x33f   : > { %s1581_s30 = smov %s1128_s11  ;;  %23 = sbr.rel (!%p21_p4) target bundleno = 5 (0x5), region = 104 }
 0x346   :  { %803 = vsyncpa [#allocation3], 1 }
 0x347   :  { %805 = vsyncpa [#allocation3 + $0x1], 1 }
 0x348   :  { %806 = vsyncpa [#allocation4], 1 }
 0x349   :  { %808 = vsyncpa [#allocation4 + $0x1], 1 }

</bundles_post_ra>
